<compile_context>
chip_gen: v5e
topology: v5e:2x2
jax: 0.10.0
libtpu: 0.0.40
codegen_flags: <defaults>
</compile_context>

<pallas_src>
import functools
import math

import jax
import jax.numpy as jnp
from jax.experimental import pallas as pl
from jax.experimental.pallas import tpu as pltpu

D_MODEL = 128
MAX_LEN = 5000


def build_pe(max_len: int, d_model: int, dtype=jnp.float32) -> jax.Array:
    """Sinusoidal positional-encoding buffer, matching the torch __init__.

    Returned lane-dense as (max_len, d_model); the batch broadcast (torch's
    unsqueeze/transpose to (max_len, 1, d_model)) happens inside the kernel.
    """
    position = jnp.arange(max_len, dtype=jnp.float32)[:, None]                 # (L, 1)
    div_term = jnp.exp(
        jnp.arange(0, d_model, 2, dtype=jnp.float32) * (-math.log(10000.0) / d_model)
    )                                                                          # (D/2,)
    ang = position * div_term                                                  # (L, D/2)
    pe = jnp.zeros((max_len, d_model), dtype=jnp.float32)
    pe = pe.at[:, 0::2].set(jnp.sin(ang))
    pe = pe.at[:, 1::2].set(jnp.cos(ang))
    return pe.astype(dtype)


def _pos_enc_kernel(seed_ref, x_ref, pe_ref, o_ref, *, batch, d_model,
                    apply_dropout, keep_thresh_u32, inv_keep_prob):
    # x_ref/o_ref : (TS, B*D) VMEM tiles (lane-dense -> unmasked vst)
    # pe_ref      : (TS, D)   VMEM tile, streamed once, added per D-slice
    if apply_dropout:
        # Two seed words: per-call seed + grid index -> decorrelated blocks
        # without the additive seed-collision problem.
        pltpu.prng_seed(seed_ref[0], pl.program_id(0))

    pe = pe_ref[...]
    for b in range(batch):          # static unroll; each slice is lane-aligned
        lo = b * d_model
        y = x_ref[:, lo:lo + d_model] + pe
        if apply_dropout:
            bits = pltpu.bitcast(pltpu.prng_random_bits(y.shape), jnp.uint32)
            keep = bits < jnp.asarray(keep_thresh_u32, dtype=jnp.uint32)
            y = jnp.where(keep,
                          y * jnp.asarray(inv_keep_prob, y.dtype),
                          jnp.zeros_like(y))
        o_ref[:, lo:lo + d_model] = y.astype(o_ref.dtype)


def positional_encoding_forward(
    x: jax.Array,
    pe: jax.Array,
    *,
    dropout_p: float = 0.1,
    training: bool = False,
    rng_seed: int = 0,
    target_tile_rows: int = 1024,
    vmem_limit_bytes=None,
    donate_x: bool = False,
    use_core_parallel: bool = False,   # set True on v7x (2 TCs) with grid >= 2
) -> jax.Array:
    """x: (seq_len, batch, d_model); pe: (max_len, d_model) or (max_len, 1, d_model)."""
    S, B, D = x.shape
    if pe.ndim == 3:
        pe = pe.reshape(pe.shape[0], pe.shape[-1])
    assert pe.shape[-1] == D and pe.shape[0] >= S
    # Stream pe in the activation dtype (halves the pe read for bf16 models).
    if pe.dtype != x.dtype:
        pe = pe.astype(x.dtype)
    BD = B * D

    # Lane/sublane-dense view (contiguous reshape -> free).
    x2 = x.reshape(S, BD)

    # ---- VMEM-aware tile selection -----------------------------------------
    # Budget against the most conservative scoped-VMEM default (16 MiB, v5e)
    # unless the caller raises vmem_limit_bytes explicitly.
    x_isize = jnp.dtype(x.dtype).itemsize
    pe_isize = jnp.dtype(pe.dtype).itemsize
    budget = int((vmem_limit_bytes if vmem_limit_bytes else 16 * 1024 * 1024) * 0.75)
    per_row = (2 * BD * x_isize       # x tile, double-buffered
               + 2 * BD * x_isize     # out tile, double-buffered
               + 2 * D * pe_isize     # pe tile, double-buffered
               + 4 * D * 4)           # in-kernel f32 temps (y slice + prng bits)
    ts = min(int(target_tile_rows), max(1, budget // per_row))
    ts = max(8, (ts // 8) * 8)
    if ts >= S:
        ts = S                        # single block; no artificial grid split
    grid = (pl.cdiv(S, ts),)

    # pe is passed whole (no pe[:S] HBM copy).  Only when the (8,128) rule
    # forces a full-dim block (ts == S with S not a multiple of 8) do we slice.
    if ts == S and (S % 8 != 0) and pe.shape[0] != S:
        pe = pe[:S]

    # ---- dropout parameters -------------------------------------------------
    apply_dropout = bool(training) and float(dropout_p) > 0.0
    keep_prob = 1.0 - float(dropout_p)
    if apply_dropout and keep_prob <= 0.0:
        return jnp.zeros_like(x)      # p == 1.0 -> everything dropped
    keep_thresh_u32 = min(int(round(keep_prob * 2.0 ** 32)), 2 ** 32 - 1)
    inv_keep_prob = (1.0 / keep_prob) if apply_dropout else 1.0

    kernel = functools.partial(
        _pos_enc_kernel,
        batch=B,
        d_model=D,
        apply_dropout=apply_dropout,
        keep_thresh_u32=keep_thresh_u32,
        inv_keep_prob=inv_keep_prob,
    )
    seed = jnp.asarray([rng_seed], dtype=jnp.int32)

    dims = (pltpu.CORE_PARALLEL,) if use_core_parallel else ("parallel",)

    out2 = pl.pallas_call(
        kernel,
        out_shape=jax.ShapeDtypeStruct((S, BD), x.dtype),
        grid_spec=pltpu.PrefetchScalarGridSpec(
            num_scalar_prefetch=1,    # dropout seed lands in SMEM
            grid=grid,
            in_specs=[
                pl.BlockSpec((ts, BD), lambda i, seed_ref: (i, 0)),
                # Full pe buffer passed; only the first ceil(S/ts) blocks are
                # ever touched, so no wrapper-side pe[:S] HBM copy.
                pl.BlockSpec((ts, D), lambda i, seed_ref: (i, 0)),
            ],
            out_specs=pl.BlockSpec((ts, BD), lambda i, seed_ref: (i, 0)),
        ),
        compiler_params=pltpu.CompilerParams(
            dimension_semantics=dims,
            vmem_limit_bytes=vmem_limit_bytes,
        ),
        # seed is operand 0, x2 is operand 1 -> alias {1: 0} when x is donated.
        input_output_aliases=({1: 0} if donate_x else {}),
    )(seed, x2, pe)

    return out2.reshape(S, B, D)


if __name__ == "__main__":
    seq_len, batch = 8, 2

    key = jax.random.PRNGKey(0)
    x = jax.random.normal(key, (seq_len, batch, D_MODEL), dtype=jnp.float32)
    pe = build_pe(MAX_LEN, D_MODEL)

    # --- eval mode (dropout == identity): exact check vs. plain-JAX reference.
    out = positional_encoding_forward(x, pe, dropout_p=0.1, training=False)
    out = jax.block_until_ready(out)
    ref = x + pe[:seq_len][:, None, :]
    assert out.shape == (seq_len, batch, D_MODEL)
    assert jnp.allclose(out, ref, atol=1e-6), "eval-mode mismatch vs reference"

    # --- training mode: dropout fused in-kernel via the TPU hardware PRNG.
    # pltpu.prng_seed/prng_random_bits have no CPU/interpret lowering, so this
    # path is only exercised when the default backend is a real TPU.
    # TODO(synk): dropout mask is not bit-identical to torch's RNG stream; the
    # inverted-dropout invariant is verified instead.
    if jax.default_backend() == "tpu":
        out_tr = positional_encoding_forward(
            x, pe, dropout_p=0.1, training=True, rng_seed=1234
        )
        out_tr = jax.block_until_ready(out_tr)
        keep_prob = 0.9
        scaled_ref = ref / keep_prob
        kept = jnp.abs(out_tr - scaled_ref) < 1e-4
        dropped = out_tr == 0.0
        assert bool(jnp.all(kept | dropped)), "training dropout invariant violated"
        frac_dropped = float(jnp.mean(dropped.astype(jnp.float32)))
        assert 0.0 <= frac_dropped <= 0.35, f"implausible drop fraction {frac_dropped}"

    print("KERNEL_OK")
</pallas_src>

<mosaic_0001>
module attributes {stable_mosaic.version = 11 : i64} {
  func.func @_pos_enc_kernel(%arg0: i32, %arg1: memref<1xi32, #tpu.memory_space<smem>>, %arg2: memref<8x256xf32, #tpu.memory_space<vmem>>, %arg3: memref<8x128xf32, #tpu.memory_space<vmem>>, %arg4: memref<8x256xf32, #tpu.memory_space<vmem>>) attributes {dimension_semantics = [#tpu.dimension_semantics<parallel>], iteration_bounds = array<i64: 1>, scalar_prefetch = 1 : i64, scratch_operands = 0 : i64, tpu.core_type = #tpu.core_type<tc>, window_params = [{transform_indices = @transform_0, window_bounds = array<i64: 8, 256>}, {transform_indices = @transform_1, window_bounds = array<i64: 8, 128>}, {transform_indices = @transform_2, window_bounds = array<i64: 8, 256>}]} {
    %c0 = arith.constant 0 : index
    %c0_0 = arith.constant 0 : index
    %0 = vector.load %arg3[%c0, %c0_0] : memref<8x128xf32, #tpu.memory_space<vmem>>, vector<8x128xf32>
    %c0_1 = arith.constant 0 : index
    %c0_2 = arith.constant 0 : index
    %1 = vector.load %arg2[%c0_1, %c0_2] : memref<8x256xf32, #tpu.memory_space<vmem>>, vector<8x128xf32>
    %2 = arith.addf %1, %0 : vector<8x128xf32>
    %c0_3 = arith.constant 0 : index
    %c0_4 = arith.constant 0 : index
    %3 = vector.load %arg4[%c0_3, %c0_4] : memref<8x256xf32, #tpu.memory_space<vmem>>, vector<8x128xf32>
    tpu.vector_store %arg4[%c0_3, %c0_4], %2 {strides = array<i32>} : memref<8x256xf32, #tpu.memory_space<vmem>>, vector<8x128xf32>,
    %c0_5 = arith.constant 0 : index
    %c128 = arith.constant 128 : index
    %4 = vector.load %arg2[%c0_5, %c128] : memref<8x256xf32, #tpu.memory_space<vmem>>, vector<8x128xf32>
    %5 = arith.addf %4, %0 : vector<8x128xf32>
    %c0_6 = arith.constant 0 : index
    %c128_7 = arith.constant 128 : index
    %6 = vector.load %arg4[%c0_6, %c128_7] : memref<8x256xf32, #tpu.memory_space<vmem>>, vector<8x128xf32>
    tpu.vector_store %arg4[%c0_6, %c128_7], %5 {strides = array<i32>} : memref<8x256xf32, #tpu.memory_space<vmem>>, vector<8x128xf32>,
    return
  }
  func.func @transform_0(%arg0: i32, %arg1: memref<1xi32, #tpu.memory_space<smem>>) -> (i32, i32) {
    %c0_i32 = arith.constant 0 : i32
    %c0_i32_0 = arith.constant 0 : i32
    return %arg0, %c0_i32 : i32, i32
  }
  func.func @transform_1(%arg0: i32, %arg1: memref<1xi32, #tpu.memory_space<smem>>) -> (i32, i32) {
    %c0_i32 = arith.constant 0 : i32
    %c0_i32_0 = arith.constant 0 : i32
    return %arg0, %c0_i32 : i32, i32
  }
  func.func @transform_2(%arg0: i32, %arg1: memref<1xi32, #tpu.memory_space<smem>>) -> (i32, i32) {
    %c0_i32 = arith.constant 0 : i32
    %c0_i32_0 = arith.constant 0 : i32
    return %arg0, %c0_i32 : i32, i32
  }
}

</mosaic_0001>

<bundles_post_ra>
// kernel: tpu_custom_call.1
= control target key start
LH: loop header
LB: loop body
LE: loop exit
PB: predicated region body
PF: predicated region fallthrough
CT: control target
= control target key end

     0   :  { %9 = vsyncpa [#allocation5], 0  ;;  %s180_s0 = inlined_call_operand.<no memory space> [shape: s32[1], index: 0, kind: input, shape index: {}]   ;;  %s181_s1 = inlined_call_operand.hbm [shape: f32[8,256], index: 1, kind: input, shape index: {}]   ;;  %s182_s2 = inlined_call_operand.hbm [shape: f32[5000,128], index: 2, kind: input, shape index: {}]   ;;  %s183_s3 = inlined_call_operand.hbm [shape: f32[8,256], index: 3, kind: output, shape index: {}]  }
   0x1   :  { %10 = vsyncpa [#allocation8], 0 }
   0x2   :  { %11 = vsyncpa [#allocation6], 0  ;;  %s17_s14 = sshll.u32 %s181_s1, 4  ;;  %s148_s15 = smov [#allocation4]   ;;  %s18_s14 = int_to_ptr.hbm [resolvable:$true] %s17_s14 }
   0x3   :  { %s19_s16 = sshll.u32 %s148_s15, 4  ;;  %s28_s18 = sshll.u32 %s182_s2, 4  ;;  %s20_s16 = int_to_ptr.vmem [resolvable:$true] %s19_s16  ;;  %s29_s18 = int_to_ptr.hbm [resolvable:$true] %s28_s18 }
   0x4   :  { %22 = dma.hbm_to_vmem [thread:$0]  %s18_s14, 256, %s20_s16, [#allocation5]  }
   0x5   :  { %s149_s19 = smov [#allocation7]  }
   0x6   :  { %s30_s20 = sshll.u32 %s149_s19, 4  ;;  %s31_s20 = int_to_ptr.vmem [resolvable:$true] %s30_s20 }
   0x7   :  { %33 = dma.hbm_to_vmem [thread:$0]  %s29_s18, 128, %s31_s20, [#allocation8]  }
   0x8   :  { %142 = dma.done.wait [#allocation5], 256  }
   0x9   :  { %143 = vsyncadd [#allocation5], 4294967040 }
   0xa   :  { %144 = dma.done.wait [#allocation8], 128  }
   0xb   :  { %145 = vsyncadd [#allocation8], 4294967168  ;;  %s150_s21 = smov [#allocation9]   ;;  %s56_s24 = sshll.u32 %s183_s3, 4  ;;  %v42_v0 = vld [vmem:[#allocation7] sm:$0xff]  ;;  %v43_v1 = vld [vmem:[#allocation4] sm:$0xff]  ;;  %s57_s24 = int_to_ptr.hbm [resolvable:$true] %s56_s24 }
   0xc   :  { %s54_s1 = sshll.u32 %s150_s21, 4  ;;  %v46_v2 = vld [vmem:[#allocation4 + $0x8] sm:$0xff]  ;;  %v44_v3 = vadd.f32 %v43_v1, %v42_v0  ;;  %s55_s1 = int_to_ptr.vmem [resolvable:$true] %s54_s1 }
   0xd   :  { %v47_v4 = vadd.f32 %v46_v2, %v42_v0 }
   0xe   :  { %45 = vst [vmem:[#allocation9] sm:$0xff] %v44_v3 }
   0xf   :  { %48 = vst [vmem:[#allocation9 + $0x8] sm:$0xff] %v47_v4 }
  0x10   :  { %59 = dma.vmem_to_hbm [thread:$0]  %s55_s1, 256, %s57_s24, [#allocation6]  }
  0x11   :  { %146 = dma.done.wait [#allocation6], 256  }
  0x12   :  { %147 = vsyncadd [#allocation6], 4294967040 }
  0x13   :  { %64 = vsyncpa [#allocation5], 1 }
  0x14   :  { %65 = vsyncpa [#allocation8], 1 }
  0x15   :  { %66 = vsyncpa [#allocation6], 1 }

</bundles_post_ra>
